<compile_context>
chip_gen: v7x
topology: tpu7x:2x2x1
jax: 0.10.0
libtpu: 0.0.40
codegen_flags: <defaults>
</compile_context>

<pallas_src>
import jax
import jax.numpy as jnp
from jax import lax
from jax.experimental import pallas as pl
from jax.experimental.pallas import tpu as pltpu


_CHUNK_LANES = 1024      # one in-kernel chunk = 8 sublanes x 128 lanes (one f32 vreg)
_MAX_TB = 16384          # lanes per grid step; 4 arrays x 576 KiB x 2 buffers ~= 4.5 MiB
                         # -> fits v5e's 16 MiB default scoped VMEM, v6e/v7x trivially


def _model_kernel(t_ref, x1_ref, x2_ref, inp_ref, o_ref):
    """out = sigmoid(inp) - (x1 + t) @ x2 for one tile of batch instances.

    Batch is packed densely across sublanes and lanes (b = r*128 + l):
      t_ref  : SMEM (3,)              t[k]
      x1_ref : VMEM (3, 3, R, 128)    [k, i, r, l]  == x1[b, i, k]
      x2_ref : VMEM (3, 3, R, 128)    [k, j, r, l]  == x2[b, k, j]
      inp_ref: VMEM (3, 3, R, 128)    [i, j, r, l]  == inp[b, i, j]
      o_ref  : VMEM (3, 3, R, 128)    [i, j, r, l]
    """
    R = x1_ref.shape[2]
    CH = 8                               # (8, 128) f32 = exactly one vreg per load
    n_chunks = R // CH                   # static (block shape is static)

    def chunk(c, carry):
        r0 = pl.multiple_of(c * CH, CH)
        sl = pl.ds(r0, CH)
        # a[k][i] = x1[:, i, k] + t[k]  (scalar splat from SMEM -> no lane broadcast)
        a = [[x1_ref[k, i, sl, :] + t_ref[k] for i in range(3)] for k in range(3)]
        b = [[x2_ref[k, j, sl, :] for j in range(3)] for k in range(3)]
        for i in range(3):
            for j in range(3):
                # Negation folded into the epilogue: sigmoid(inp) - (x1 + t) @ x2.
                acc = jax.nn.sigmoid(inp_ref[i, j, sl, :])
                for k in range(3):
                    acc = acc - a[k][i] * b[k][j]
                o_ref[i, j, sl, :] = acc
        return carry

    lax.fori_loop(0, n_chunks, chunk, 0, unroll=True)


def model_forward_packed(x1_p, x2_p, inp_p, t, *, tb=None):
    """Batched forward; batch already on the trailing (lane-dense) axis.

    x1_p : (3, 3, B) f32 packed [k, i, b]  (x1_p[k, i, b] == x1[b, i, k])
    x2_p : (3, 3, B) f32 packed [k, j, b]  (x2_p[k, j, b] == x2[b, k, j])
    inp_p: (3, 3, B) f32 packed [i, j, b]
    t    : (3,)      f32
    returns (3, 3, B) f32 packed [i, j, b]
    """
    B = x1_p.shape[-1]
    if tb is None:
        tb = min(_MAX_TB, pl.cdiv(B, _CHUNK_LANES) * _CHUNK_LANES)
    tb = max(_CHUNK_LANES, (tb // _CHUNK_LANES) * _CHUNK_LANES)
    n_blk = pl.cdiv(B, tb)
    Bp = n_blk * tb
    if Bp != B:
        pad = ((0, 0), (0, 0), (0, Bp - B))
        x1_p, x2_p, inp_p = (jnp.pad(v, pad) for v in (x1_p, x2_p, inp_p))

    # Free contiguous reshape: pack the batch across sublanes AND lanes so every
    # in-kernel (8, 128) chunk is a fully dense vreg.
    shp4 = (3, 3, Bp // 128, 128)
    x1_4 = x1_p.astype(jnp.float32).reshape(shp4)
    x2_4 = x2_p.astype(jnp.float32).reshape(shp4)
    inp_4 = inp_p.astype(jnp.float32).reshape(shp4)

    tbr = tb // 128
    blk = pl.BlockSpec((3, 3, tbr, 128), lambda b: (0, 0, b, 0))
    cost = pl.CostEstimate(
        flops=(2 * 3 * 3 * 3 + 2 * 9) * Bp,   # matmul + bias add + epilogue sub
        transcendentals=9 * Bp,               # sigmoid
        bytes_accessed=4 * 9 * 4 * Bp,        # 3 reads + 1 write, 9 f32 each
    )
    out4 = pl.pallas_call(
        _model_kernel,
        out_shape=jax.ShapeDtypeStruct(shp4, jnp.float32),
        grid=(n_blk,),
        in_specs=[
            pl.BlockSpec(memory_space=pltpu.MemorySpace.SMEM),   # t: 3 scalars
            blk, blk, blk,
        ],
        out_specs=blk,
        compiler_params=pltpu.CompilerParams(
            dimension_semantics=("parallel",)),   # batch tiles shard across TCs on v7x
        cost_estimate=cost,
    )(t.astype(jnp.float32), x1_4, x2_4, inp_4)
    return out4.reshape(3, 3, Bp)[..., :B]


def model_forward_batched(x1b, x2b, inpb, t, *, tb=None):
    """Convenience path for (B, 3, 3)-layout data.

    The transposes below are pure layout plumbing; for a memory-bound kernel they
    roughly triple end-to-end HBM traffic.  Prefer producing/consuming data in the
    packed (3, 3, B) layout and calling model_forward_packed directly.
    """
    # TODO(synk): in a real pipeline, emit x1/x2/inp in the packed layout upstream
    # so these HBM transpose passes disappear entirely.
    x1_p = jnp.transpose(x1b, (2, 1, 0))    # [k, i, b]
    x2_p = jnp.transpose(x2b, (1, 2, 0))    # [k, j, b]
    inp_p = jnp.transpose(inpb, (1, 2, 0))  # [i, j, b]
    out_p = model_forward_packed(x1_p, x2_p, inp_p, t, tb=tb)
    return jnp.transpose(out_p, (2, 0, 1))  # back to (B, 3, 3)


def model_forward(x1, x2, inp, t):
    """Single-instance forward matching the torch module exactly.

    Per the perf review: a lone 3x3 forward is pure launch overhead as a custom
    call, so it is inlined as plain jnp and left to XLA to fuse.
    """
    return jnp.dot(x1 + t, -x2) + jax.nn.sigmoid(inp)


if __name__ == "__main__":
    key = jax.random.PRNGKey(0)
    k1, k2, k3, k4, k5, k6, k7 = jax.random.split(key, 7)

    t = jax.random.normal(k1, (3,), dtype=jnp.float32)       # self.t parameter

    # --- 1) single-instance forward (exact module semantics, plain jnp) ---
    x1 = jax.random.normal(k2, (3, 3), dtype=jnp.float32)
    x2 = jax.random.normal(k3, (3, 3), dtype=jnp.float32)
    inp = jax.random.normal(k4, (3, 3), dtype=jnp.float32)
    out1 = model_forward(x1, x2, inp, t)
    ref1 = (jnp.dot(x1 + t, -x2, precision=jax.lax.Precision.HIGHEST)
            + jax.nn.sigmoid(inp))
    assert jnp.allclose(out1, ref1, atol=1e-5, rtol=1e-5), "single-instance mismatch"

    # --- 2) packed batched Pallas kernel (exercises multiple grid blocks) ---
    B = 2048
    x1_p = jax.random.normal(k5, (3, 3, B), dtype=jnp.float32)   # [k, i, b]
    x2_p = jax.random.normal(k6, (3, 3, B), dtype=jnp.float32)   # [k, j, b]
    inp_p = jax.random.normal(k7, (3, 3, B), dtype=jnp.float32)  # [i, j, b]

    out_p = model_forward_packed(x1_p, x2_p, inp_p, t, tb=1024)  # grid=(2,)
    out_p = jax.block_until_ready(out_p)

    # Reference in (B, 3, 3) layout (transposes here are test-only plumbing).
    x1b = jnp.transpose(x1_p, (2, 1, 0))     # x1b[b, i, k]
    x2b = jnp.transpose(x2_p, (2, 0, 1))     # x2b[b, k, j]
    inpb = jnp.transpose(inp_p, (2, 0, 1))   # inpb[b, i, j]
    refb = (jnp.einsum("bik,bkj->bij", x1b + t, -x2b,
                       precision=jax.lax.Precision.HIGHEST)
            + jax.nn.sigmoid(inpb))
    assert jnp.allclose(jnp.transpose(out_p, (2, 0, 1)), refb,
                        atol=1e-5, rtol=1e-5), "packed batched mismatch"

    # --- 3) (B, 3, 3) convenience path with ragged batch (exercises padding) ---
    Br = 300
    out_r = model_forward_batched(x1b[:Br], x2b[:Br], inpb[:Br], t)
    out_r = jax.block_until_ready(out_r)
    assert jnp.allclose(out_r, refb[:Br], atol=1e-5, rtol=1e-5), "ragged batch mismatch"

    print("KERNEL_OK")
</pallas_src>

<mosaic_0001>
module attributes {stable_mosaic.version = 11 : i64} {
  func.func @_model_kernel(%arg0: i32, %arg1: memref<3xf32, #tpu.memory_space<smem>>, %arg2: memref<3x3x8x128xf32, #tpu.memory_space<vmem>>, %arg3: memref<3x3x8x128xf32, #tpu.memory_space<vmem>>, %arg4: memref<3x3x8x128xf32, #tpu.memory_space<vmem>>, %arg5: memref<3x3x8x128xf32, #tpu.memory_space<vmem>>) attributes {dimension_semantics = [#tpu.dimension_semantics<parallel>], iteration_bounds = array<i64: 2>, scalar_prefetch = 0 : i64, scratch_operands = 0 : i64, tpu.core_type = #tpu.core_type<tc>, window_params = [{transform_indices = @transform_0, window_bounds = array<i64: 3>}, {transform_indices = @transform_1, window_bounds = array<i64: 3, 3, 8, 128>}, {transform_indices = @transform_2, window_bounds = array<i64: 3, 3, 8, 128>}, {transform_indices = @transform_3, window_bounds = array<i64: 3, 3, 8, 128>}, {transform_indices = @transform_4, window_bounds = array<i64: 3, 3, 8, 128>}]} {
    %c0_i32 = arith.constant 0 : i32
    %c8_i32 = arith.constant 8 : i32
    %0 = arith.muli %c0_i32, %c8_i32 : i32
    %1 = tpu.assume_multiple %0, 8 : i32
    %c0 = arith.constant 0 : index
    %c0_0 = arith.constant 0 : index
    %2 = arith.index_cast %1 : i32 to index
    %c0_1 = arith.constant 0 : index
    %3 = vector.load %arg2[%c0, %c0_0, %2, %c0_1] : memref<3x3x8x128xf32, #tpu.memory_space<vmem>>, vector<1x1x8x128xf32>
    %4 = vector.shape_cast %3 : vector<1x1x8x128xf32> to vector<8x128xf32>
    %c0_2 = arith.constant 0 : index
    %5 = memref.load %arg1[%c0_2] : memref<3xf32, #tpu.memory_space<smem>>
    %6 = vector.broadcast %5 : f32 to vector<8x128xf32>
    %7 = arith.addf %4, %6 : vector<8x128xf32>
    %c0_3 = arith.constant 0 : index
    %c1 = arith.constant 1 : index
    %8 = arith.index_cast %1 : i32 to index
    %c0_4 = arith.constant 0 : index
    %9 = vector.load %arg2[%c0_3, %c1, %8, %c0_4] : memref<3x3x8x128xf32, #tpu.memory_space<vmem>>, vector<1x1x8x128xf32>
    %10 = vector.shape_cast %9 : vector<1x1x8x128xf32> to vector<8x128xf32>
    %c0_5 = arith.constant 0 : index
    %11 = memref.load %arg1[%c0_5] : memref<3xf32, #tpu.memory_space<smem>>
    %12 = vector.broadcast %11 : f32 to vector<8x128xf32>
    %13 = arith.addf %10, %12 : vector<8x128xf32>
    %c0_6 = arith.constant 0 : index
    %c2 = arith.constant 2 : index
    %14 = arith.index_cast %1 : i32 to index
    %c0_7 = arith.constant 0 : index
    %15 = vector.load %arg2[%c0_6, %c2, %14, %c0_7] : memref<3x3x8x128xf32, #tpu.memory_space<vmem>>, vector<1x1x8x128xf32>
    %16 = vector.shape_cast %15 : vector<1x1x8x128xf32> to vector<8x128xf32>
    %c0_8 = arith.constant 0 : index
    %17 = memref.load %arg1[%c0_8] : memref<3xf32, #tpu.memory_space<smem>>
    %18 = vector.broadcast %17 : f32 to vector<8x128xf32>
    %19 = arith.addf %16, %18 : vector<8x128xf32>
    %c1_9 = arith.constant 1 : index
    %c0_10 = arith.constant 0 : index
    %20 = arith.index_cast %1 : i32 to index
    %c0_11 = arith.constant 0 : index
    %21 = vector.load %arg2[%c1_9, %c0_10, %20, %c0_11] : memref<3x3x8x128xf32, #tpu.memory_space<vmem>>, vector<1x1x8x128xf32>
    %22 = vector.shape_cast %21 : vector<1x1x8x128xf32> to vector<8x128xf32>
    %c1_12 = arith.constant 1 : index
    %23 = memref.load %arg1[%c1_12] : memref<3xf32, #tpu.memory_space<smem>>
    %24 = vector.broadcast %23 : f32 to vector<8x128xf32>
    %25 = arith.addf %22, %24 : vector<8x128xf32>
    %c1_13 = arith.constant 1 : index
    %c1_14 = arith.constant 1 : index
    %26 = arith.index_cast %1 : i32 to index
    %c0_15 = arith.constant 0 : index
    %27 = vector.load %arg2[%c1_13, %c1_14, %26, %c0_15] : memref<3x3x8x128xf32, #tpu.memory_space<vmem>>, vector<1x1x8x128xf32>
    %28 = vector.shape_cast %27 : vector<1x1x8x128xf32> to vector<8x128xf32>
    %c1_16 = arith.constant 1 : index
    %29 = memref.load %arg1[%c1_16] : memref<3xf32, #tpu.memory_space<smem>>
    %30 = vector.broadcast %29 : f32 to vector<8x128xf32>
    %31 = arith.addf %28, %30 : vector<8x128xf32>
    %c1_17 = arith.constant 1 : index
    %c2_18 = arith.constant 2 : index
    %32 = arith.index_cast %1 : i32 to index
    %c0_19 = arith.constant 0 : index
    %33 = vector.load %arg2[%c1_17, %c2_18, %32, %c0_19] : memref<3x3x8x128xf32, #tpu.memory_space<vmem>>, vector<1x1x8x128xf32>
    %34 = vector.shape_cast %33 : vector<1x1x8x128xf32> to vector<8x128xf32>
    %c1_20 = arith.constant 1 : index
    %35 = memref.load %arg1[%c1_20] : memref<3xf32, #tpu.memory_space<smem>>
    %36 = vector.broadcast %35 : f32 to vector<8x128xf32>
    %37 = arith.addf %34, %36 : vector<8x128xf32>
    %c2_21 = arith.constant 2 : index
    %c0_22 = arith.constant 0 : index
    %38 = arith.index_cast %1 : i32 to index
    %c0_23 = arith.constant 0 : index
    %39 = vector.load %arg2[%c2_21, %c0_22, %38, %c0_23] : memref<3x3x8x128xf32, #tpu.memory_space<vmem>>, vector<1x1x8x128xf32>
    %40 = vector.shape_cast %39 : vector<1x1x8x128xf32> to vector<8x128xf32>
    %c2_24 = arith.constant 2 : index
    %41 = memref.load %arg1[%c2_24] : memref<3xf32, #tpu.memory_space<smem>>
    %42 = vector.broadcast %41 : f32 to vector<8x128xf32>
    %43 = arith.addf %40, %42 : vector<8x128xf32>
    %c2_25 = arith.constant 2 : index
    %c1_26 = arith.constant 1 : index
    %44 = arith.index_cast %1 : i32 to index
    %c0_27 = arith.constant 0 : index
    %45 = vector.load %arg2[%c2_25, %c1_26, %44, %c0_27] : memref<3x3x8x128xf32, #tpu.memory_space<vmem>>, vector<1x1x8x128xf32>
    %46 = vector.shape_cast %45 : vector<1x1x8x128xf32> to vector<8x128xf32>
    %c2_28 = arith.constant 2 : index
    %47 = memref.load %arg1[%c2_28] : memref<3xf32, #tpu.memory_space<smem>>
    %48 = vector.broadcast %47 : f32 to vector<8x128xf32>
    %49 = arith.addf %46, %48 : vector<8x128xf32>
    %c2_29 = arith.constant 2 : index
    %c2_30 = arith.constant 2 : index
    %50 = arith.index_cast %1 : i32 to index
    %c0_31 = arith.constant 0 : index
    %51 = vector.load %arg2[%c2_29, %c2_30, %50, %c0_31] : memref<3x3x8x128xf32, #tpu.memory_space<vmem>>, vector<1x1x8x128xf32>
    %52 = vector.shape_cast %51 : vector<1x1x8x128xf32> to vector<8x128xf32>
    %c2_32 = arith.constant 2 : index
    %53 = memref.load %arg1[%c2_32] : memref<3xf32, #tpu.memory_space<smem>>
    %54 = vector.broadcast %53 : f32 to vector<8x128xf32>
    %55 = arith.addf %52, %54 : vector<8x128xf32>
    %c0_33 = arith.constant 0 : index
    %c0_34 = arith.constant 0 : index
    %56 = arith.index_cast %1 : i32 to index
    %c0_35 = arith.constant 0 : index
    %57 = vector.load %arg3[%c0_33, %c0_34, %56, %c0_35] : memref<3x3x8x128xf32, #tpu.memory_space<vmem>>, vector<1x1x8x128xf32>
    %58 = vector.shape_cast %57 : vector<1x1x8x128xf32> to vector<8x128xf32>
    %c0_36 = arith.constant 0 : index
    %c1_37 = arith.constant 1 : index
    %59 = arith.index_cast %1 : i32 to index
    %c0_38 = arith.constant 0 : index
    %60 = vector.load %arg3[%c0_36, %c1_37, %59, %c0_38] : memref<3x3x8x128xf32, #tpu.memory_space<vmem>>, vector<1x1x8x128xf32>
    %61 = vector.shape_cast %60 : vector<1x1x8x128xf32> to vector<8x128xf32>
    %c0_39 = arith.constant 0 : index
    %c2_40 = arith.constant 2 : index
    %62 = arith.index_cast %1 : i32 to index
    %c0_41 = arith.constant 0 : index
    %63 = vector.load %arg3[%c0_39, %c2_40, %62, %c0_41] : memref<3x3x8x128xf32, #tpu.memory_space<vmem>>, vector<1x1x8x128xf32>
    %64 = vector.shape_cast %63 : vector<1x1x8x128xf32> to vector<8x128xf32>
    %c1_42 = arith.constant 1 : index
    %c0_43 = arith.constant 0 : index
    %65 = arith.index_cast %1 : i32 to index
    %c0_44 = arith.constant 0 : index
    %66 = vector.load %arg3[%c1_42, %c0_43, %65, %c0_44] : memref<3x3x8x128xf32, #tpu.memory_space<vmem>>, vector<1x1x8x128xf32>
    %67 = vector.shape_cast %66 : vector<1x1x8x128xf32> to vector<8x128xf32>
    %c1_45 = arith.constant 1 : index
    %c1_46 = arith.constant 1 : index
    %68 = arith.index_cast %1 : i32 to index
    %c0_47 = arith.constant 0 : index
    %69 = vector.load %arg3[%c1_45, %c1_46, %68, %c0_47] : memref<3x3x8x128xf32, #tpu.memory_space<vmem>>, vector<1x1x8x128xf32>
    %70 = vector.shape_cast %69 : vector<1x1x8x128xf32> to vector<8x128xf32>
    %c1_48 = arith.constant 1 : index
    %c2_49 = arith.constant 2 : index
    %71 = arith.index_cast %1 : i32 to index
    %c0_50 = arith.constant 0 : index
    %72 = vector.load %arg3[%c1_48, %c2_49, %71, %c0_50] : memref<3x3x8x128xf32, #tpu.memory_space<vmem>>, vector<1x1x8x128xf32>
    %73 = vector.shape_cast %72 : vector<1x1x8x128xf32> to vector<8x128xf32>
    %c2_51 = arith.constant 2 : index
    %c0_52 = arith.constant 0 : index
    %74 = arith.index_cast %1 : i32 to index
    %c0_53 = arith.constant 0 : index
    %75 = vector.load %arg3[%c2_51, %c0_52, %74, %c0_53] : memref<3x3x8x128xf32, #tpu.memory_space<vmem>>, vector<1x1x8x128xf32>
    %76 = vector.shape_cast %75 : vector<1x1x8x128xf32> to vector<8x128xf32>
    %c2_54 = arith.constant 2 : index
    %c1_55 = arith.constant 1 : index
    %77 = arith.index_cast %1 : i32 to index
    %c0_56 = arith.constant 0 : index
    %78 = vector.load %arg3[%c2_54, %c1_55, %77, %c0_56] : memref<3x3x8x128xf32, #tpu.memory_space<vmem>>, vector<1x1x8x128xf32>
    %79 = vector.shape_cast %78 : vector<1x1x8x128xf32> to vector<8x128xf32>
    %c2_57 = arith.constant 2 : index
    %c2_58 = arith.constant 2 : index
    %80 = arith.index_cast %1 : i32 to index
    %c0_59 = arith.constant 0 : index
    %81 = vector.load %arg3[%c2_57, %c2_58, %80, %c0_59] : memref<3x3x8x128xf32, #tpu.memory_space<vmem>>, vector<1x1x8x128xf32>
    %82 = vector.shape_cast %81 : vector<1x1x8x128xf32> to vector<8x128xf32>
    %c0_60 = arith.constant 0 : index
    %c0_61 = arith.constant 0 : index
    %83 = arith.index_cast %1 : i32 to index
    %c0_62 = arith.constant 0 : index
    %84 = vector.load %arg4[%c0_60, %c0_61, %83, %c0_62] : memref<3x3x8x128xf32, #tpu.memory_space<vmem>>, vector<1x1x8x128xf32>
    %85 = vector.shape_cast %84 : vector<1x1x8x128xf32> to vector<8x128xf32>
    %86 = arith.negf %85 : vector<8x128xf32>
    %87 = math.exp %86 : vector<8x128xf32>
    %cst = arith.constant 1.000000e+00 : f32
    %88 = vector.broadcast %cst : f32 to vector<8x128xf32>
    %89 = arith.addf %88, %87 : vector<8x128xf32>
    %90 = arith.divf %88, %89 : vector<8x128xf32>
    %91 = arith.mulf %7, %58 : vector<8x128xf32>
    %92 = arith.subf %90, %91 : vector<8x128xf32>
    %93 = arith.mulf %25, %67 : vector<8x128xf32>
    %94 = arith.subf %92, %93 : vector<8x128xf32>
    %95 = arith.mulf %43, %76 : vector<8x128xf32>
    %96 = arith.subf %94, %95 : vector<8x128xf32>
    %c0_63 = arith.constant 0 : index
    %c0_64 = arith.constant 0 : index
    %97 = arith.index_cast %1 : i32 to index
    %c0_65 = arith.constant 0 : index
    %98 = vector.load %arg5[%c0_63, %c0_64, %97, %c0_65] : memref<3x3x8x128xf32, #tpu.memory_space<vmem>>, vector<1x1x8x128xf32>
    %99 = vector.shape_cast %98 : vector<1x1x8x128xf32> to vector<8x128xf32>
    %100 = vector.shape_cast %96 : vector<8x128xf32> to vector<1x1x8x128xf32>
    tpu.vector_store %arg5[%c0_63, %c0_64, %97, %c0_65], %100 {strides = array<i32>} : memref<3x3x8x128xf32, #tpu.memory_space<vmem>>, vector<1x1x8x128xf32>,
    %c0_66 = arith.constant 0 : index
    %c1_67 = arith.constant 1 : index
    %101 = arith.index_cast %1 : i32 to index
    %c0_68 = arith.constant 0 : index
    %102 = vector.load %arg4[%c0_66, %c1_67, %101, %c0_68] : memref<3x3x8x128xf32, #tpu.memory_space<vmem>>, vector<1x1x8x128xf32>
    %103 = vector.shape_cast %102 : vector<1x1x8x128xf32> to vector<8x128xf32>
    %104 = arith.negf %103 : vector<8x128xf32>
    %105 = math.exp %104 : vector<8x128xf32>
    %cst_69 = arith.constant 1.000000e+00 : f32
    %106 = vector.broadcast %cst_69 : f32 to vector<8x128xf32>
    %107 = arith.addf %106, %105 : vector<8x128xf32>
    %108 = arith.divf %106, %107 : vector<8x128xf32>
    %109 = arith.mulf %7, %61 : vector<8x128xf32>
    %110 = arith.subf %108, %109 : vector<8x128xf32>
    %111 = arith.mulf %25, %70 : vector<8x128xf32>
    %112 = arith.subf %110, %111 : vector<8x128xf32>
    %113 = arith.mulf %43, %79 : vector<8x128xf32>
    %114 = arith.subf %112, %113 : vector<8x128xf32>
    %c0_70 = arith.constant 0 : index
    %c1_71 = arith.constant 1 : index
    %115 = arith.index_cast %1 : i32 to index
    %c0_72 = arith.constant 0 : index
    %116 = vector.load %arg5[%c0_70, %c1_71, %115, %c0_72] : memref<3x3x8x128xf32, #tpu.memory_space<vmem>>, vector<1x1x8x128xf32>
    %117 = vector.shape_cast %116 : vector<1x1x8x128xf32> to vector<8x128xf32>
    %118 = vector.shape_cast %114 : vector<8x128xf32> to vector<1x1x8x128xf32>
    tpu.vector_store %arg5[%c0_70, %c1_71, %115, %c0_72], %118 {strides = array<i32>} : memref<3x3x8x128xf32, #tpu.memory_space<vmem>>, vector<1x1x8x128xf32>,
    %c0_73 = arith.constant 0 : index
    %c2_74 = arith.constant 2 : index
    %119 = arith.index_cast %1 : i32 to index
    %c0_75 = arith.constant 0 : index
    %120 = vector.load %arg4[%c0_73, %c2_74, %119, %c0_75] : memref<3x3x8x128xf32, #tpu.memory_space<vmem>>, vector<1x1x8x128xf32>
    %121 = vector.shape_cast %120 : vector<1x1x8x128xf32> to vector<8x128xf32>
    %122 = arith.negf %121 : vector<8x128xf32>
    %123 = math.exp %122 : vector<8x128xf32>
    %cst_76 = arith.constant 1.000000e+00 : f32
    %124 = vector.broadcast %cst_76 : f32 to vector<8x128xf32>
    %125 = arith.addf %124, %123 : vector<8x128xf32>
    %126 = arith.divf %124, %125 : vector<8x128xf32>
    %127 = arith.mulf %7, %64 : vector<8x128xf32>
    %128 = arith.subf %126, %127 : vector<8x128xf32>
    %129 = arith.mulf %25, %73 : vector<8x128xf32>
    %130 = arith.subf %128, %129 : vector<8x128xf32>
    %131 = arith.mulf %43, %82 : vector<8x128xf32>
    %132 = arith.subf %130, %131 : vector<8x128xf32>
    %c0_77 = arith.constant 0 : index
    %c2_78 = arith.constant 2 : index
    %133 = arith.index_cast %1 : i32 to index
    %c0_79 = arith.constant 0 : index
    %134 = vector.load %arg5[%c0_77, %c2_78, %133, %c0_79] : memref<3x3x8x128xf32, #tpu.memory_space<vmem>>, vector<1x1x8x128xf32>
    %135 = vector.shape_cast %134 : vector<1x1x8x128xf32> to vector<8x128xf32>
    %136 = vector.shape_cast %132 : vector<8x128xf32> to vector<1x1x8x128xf32>
    tpu.vector_store %arg5[%c0_77, %c2_78, %133, %c0_79], %136 {strides = array<i32>} : memref<3x3x8x128xf32, #tpu.memory_space<vmem>>, vector<1x1x8x128xf32>,
    %c1_80 = arith.constant 1 : index
    %c0_81 = arith.constant 0 : index
    %137 = arith.index_cast %1 : i32 to index
    %c0_82 = arith.constant 0 : index
    %138 = vector.load %arg4[%c1_80, %c0_81, %137, %c0_82] : memref<3x3x8x128xf32, #tpu.memory_space<vmem>>, vector<1x1x8x128xf32>
    %139 = vector.shape_cast %138 : vector<1x1x8x128xf32> to vector<8x128xf32>
    %140 = arith.negf %139 : vector<8x128xf32>
    %141 = math.exp %140 : vector<8x128xf32>
    %cst_83 = arith.constant 1.000000e+00 : f32
    %142 = vector.broadcast %cst_83 : f32 to vector<8x128xf32>
    %143 = arith.addf %142, %141 : vector<8x128xf32>
    %144 = arith.divf %142, %143 : vector<8x128xf32>
    %145 = arith.mulf %13, %58 : vector<8x128xf32>
    %146 = arith.subf %144, %145 : vector<8x128xf32>
    %147 = arith.mulf %31, %67 : vector<8x128xf32>
    %148 = arith.subf %146, %147 : vector<8x128xf32>
    %149 = arith.mulf %49, %76 : vector<8x128xf32>
    %150 = arith.subf %148, %149 : vector<8x128xf32>
    %c1_84 = arith.constant 1 : index
    %c0_85 = arith.constant 0 : index
    %151 = arith.index_cast %1 : i32 to index
    %c0_86 = arith.constant 0 : index
    %152 = vector.load %arg5[%c1_84, %c0_85, %151, %c0_86] : memref<3x3x8x128xf32, #tpu.memory_space<vmem>>, vector<1x1x8x128xf32>
    %153 = vector.shape_cast %152 : vector<1x1x8x128xf32> to vector<8x128xf32>
    %154 = vector.shape_cast %150 : vector<8x128xf32> to vector<1x1x8x128xf32>
    tpu.vector_store %arg5[%c1_84, %c0_85, %151, %c0_86], %154 {strides = array<i32>} : memref<3x3x8x128xf32, #tpu.memory_space<vmem>>, vector<1x1x8x128xf32>,
    %c1_87 = arith.constant 1 : index
    %c1_88 = arith.constant 1 : index
    %155 = arith.index_cast %1 : i32 to index
    %c0_89 = arith.constant 0 : index
    %156 = vector.load %arg4[%c1_87, %c1_88, %155, %c0_89] : memref<3x3x8x128xf32, #tpu.memory_space<vmem>>, vector<1x1x8x128xf32>
    %157 = vector.shape_cast %156 : vector<1x1x8x128xf32> to vector<8x128xf32>
    %158 = arith.negf %157 : vector<8x128xf32>
    %159 = math.exp %158 : vector<8x128xf32>
    %cst_90 = arith.constant 1.000000e+00 : f32
    %160 = vector.broadcast %cst_90 : f32 to vector<8x128xf32>
    %161 = arith.addf %160, %159 : vector<8x128xf32>
    %162 = arith.divf %160, %161 : vector<8x128xf32>
    %163 = arith.mulf %13, %61 : vector<8x128xf32>
    %164 = arith.subf %162, %163 : vector<8x128xf32>
    %165 = arith.mulf %31, %70 : vector<8x128xf32>
    %166 = arith.subf %164, %165 : vector<8x128xf32>
    %167 = arith.mulf %49, %79 : vector<8x128xf32>
    %168 = arith.subf %166, %167 : vector<8x128xf32>
    %c1_91 = arith.constant 1 : index
    %c1_92 = arith.constant 1 : index
    %169 = arith.index_cast %1 : i32 to index
    %c0_93 = arith.constant 0 : index
    %170 = vector.load %arg5[%c1_91, %c1_92, %169, %c0_93] : memref<3x3x8x128xf32, #tpu.memory_space<vmem>>, vector<1x1x8x128xf32>
    %171 = vector.shape_cast %170 : vector<1x1x8x128xf32> to vector<8x128xf32>
    %172 = vector.shape_cast %168 : vector<8x128xf32> to vector<1x1x8x128xf32>
    tpu.vector_store %arg5[%c1_91, %c1_92, %169, %c0_93], %172 {strides = array<i32>} : memref<3x3x8x128xf32, #tpu.memory_space<vmem>>, vector<1x1x8x128xf32>,
    %c1_94 = arith.constant 1 : index
    %c2_95 = arith.constant 2 : index
    %173 = arith.index_cast %1 : i32 to index
    %c0_96 = arith.constant 0 : index
    %174 = vector.load %arg4[%c1_94, %c2_95, %173, %c0_96] : memref<3x3x8x128xf32, #tpu.memory_space<vmem>>, vector<1x1x8x128xf32>
    %175 = vector.shape_cast %174 : vector<1x1x8x128xf32> to vector<8x128xf32>
    %176 = arith.negf %175 : vector<8x128xf32>
    %177 = math.exp %176 : vector<8x128xf32>
    %cst_97 = arith.constant 1.000000e+00 : f32
    %178 = vector.broadcast %cst_97 : f32 to vector<8x128xf32>
    %179 = arith.addf %178, %177 : vector<8x128xf32>
    %180 = arith.divf %178, %179 : vector<8x128xf32>
    %181 = arith.mulf %13, %64 : vector<8x128xf32>
    %182 = arith.subf %180, %181 : vector<8x128xf32>
    %183 = arith.mulf %31, %73 : vector<8x128xf32>
    %184 = arith.subf %182, %183 : vector<8x128xf32>
    %185 = arith.mulf %49, %82 : vector<8x128xf32>
    %186 = arith.subf %184, %185 : vector<8x128xf32>
    %c1_98 = arith.constant 1 : index
    %c2_99 = arith.constant 2 : index
    %187 = arith.index_cast %1 : i32 to index
    %c0_100 = arith.constant 0 : index
    %188 = vector.load %arg5[%c1_98, %c2_99, %187, %c0_100] : memref<3x3x8x128xf32, #tpu.memory_space<vmem>>, vector<1x1x8x128xf32>
    %189 = vector.shape_cast %188 : vector<1x1x8x128xf32> to vector<8x128xf32>
    %190 = vector.shape_cast %186 : vector<8x128xf32> to vector<1x1x8x128xf32>
    tpu.vector_store %arg5[%c1_98, %c2_99, %187, %c0_100], %190 {strides = array<i32>} : memref<3x3x8x128xf32, #tpu.memory_space<vmem>>, vector<1x1x8x128xf32>,
    %c2_101 = arith.constant 2 : index
    %c0_102 = arith.constant 0 : index
    %191 = arith.index_cast %1 : i32 to index
    %c0_103 = arith.constant 0 : index
    %192 = vector.load %arg4[%c2_101, %c0_102, %191, %c0_103] : memref<3x3x8x128xf32, #tpu.memory_space<vmem>>, vector<1x1x8x128xf32>
    %193 = vector.shape_cast %192 : vector<1x1x8x128xf32> to vector<8x128xf32>
    %194 = arith.negf %193 : vector<8x128xf32>
    %195 = math.exp %194 : vector<8x128xf32>
    %cst_104 = arith.constant 1.000000e+00 : f32
    %196 = vector.broadcast %cst_104 : f32 to vector<8x128xf32>
    %197 = arith.addf %196, %195 : vector<8x128xf32>
    %198 = arith.divf %196, %197 : vector<8x128xf32>
    %199 = arith.mulf %19, %58 : vector<8x128xf32>
    %200 = arith.subf %198, %199 : vector<8x128xf32>
    %201 = arith.mulf %37, %67 : vector<8x128xf32>
    %202 = arith.subf %200, %201 : vector<8x128xf32>
    %203 = arith.mulf %55, %76 : vector<8x128xf32>
    %204 = arith.subf %202, %203 : vector<8x128xf32>
    %c2_105 = arith.constant 2 : index
    %c0_106 = arith.constant 0 : index
    %205 = arith.index_cast %1 : i32 to index
    %c0_107 = arith.constant 0 : index
    %206 = vector.load %arg5[%c2_105, %c0_106, %205, %c0_107] : memref<3x3x8x128xf32, #tpu.memory_space<vmem>>, vector<1x1x8x128xf32>
    %207 = vector.shape_cast %206 : vector<1x1x8x128xf32> to vector<8x128xf32>
    %208 = vector.shape_cast %204 : vector<8x128xf32> to vector<1x1x8x128xf32>
    tpu.vector_store %arg5[%c2_105, %c0_106, %205, %c0_107], %208 {strides = array<i32>} : memref<3x3x8x128xf32, #tpu.memory_space<vmem>>, vector<1x1x8x128xf32>,
    %c2_108 = arith.constant 2 : index
    %c1_109 = arith.constant 1 : index
    %209 = arith.index_cast %1 : i32 to index
    %c0_110 = arith.constant 0 : index
    %210 = vector.load %arg4[%c2_108, %c1_109, %209, %c0_110] : memref<3x3x8x128xf32, #tpu.memory_space<vmem>>, vector<1x1x8x128xf32>
    %211 = vector.shape_cast %210 : vector<1x1x8x128xf32> to vector<8x128xf32>
    %212 = arith.negf %211 : vector<8x128xf32>
    %213 = math.exp %212 : vector<8x128xf32>
    %cst_111 = arith.constant 1.000000e+00 : f32
    %214 = vector.broadcast %cst_111 : f32 to vector<8x128xf32>
    %215 = arith.addf %214, %213 : vector<8x128xf32>
    %216 = arith.divf %214, %215 : vector<8x128xf32>
    %217 = arith.mulf %19, %61 : vector<8x128xf32>
    %218 = arith.subf %216, %217 : vector<8x128xf32>
    %219 = arith.mulf %37, %70 : vector<8x128xf32>
    %220 = arith.subf %218, %219 : vector<8x128xf32>
    %221 = arith.mulf %55, %79 : vector<8x128xf32>
    %222 = arith.subf %220, %221 : vector<8x128xf32>
    %c2_112 = arith.constant 2 : index
    %c1_113 = arith.constant 1 : index
    %223 = arith.index_cast %1 : i32 to index
    %c0_114 = arith.constant 0 : index
    %224 = vector.load %arg5[%c2_112, %c1_113, %223, %c0_114] : memref<3x3x8x128xf32, #tpu.memory_space<vmem>>, vector<1x1x8x128xf32>
    %225 = vector.shape_cast %224 : vector<1x1x8x128xf32> to vector<8x128xf32>
    %226 = vector.shape_cast %222 : vector<8x128xf32> to vector<1x1x8x128xf32>
    tpu.vector_store %arg5[%c2_112, %c1_113, %223, %c0_114], %226 {strides = array<i32>} : memref<3x3x8x128xf32, #tpu.memory_space<vmem>>, vector<1x1x8x128xf32>,
    %c2_115 = arith.constant 2 : index
    %c2_116 = arith.constant 2 : index
    %227 = arith.index_cast %1 : i32 to index
    %c0_117 = arith.constant 0 : index
    %228 = vector.load %arg4[%c2_115, %c2_116, %227, %c0_117] : memref<3x3x8x128xf32, #tpu.memory_space<vmem>>, vector<1x1x8x128xf32>
    %229 = vector.shape_cast %228 : vector<1x1x8x128xf32> to vector<8x128xf32>
    %230 = arith.negf %229 : vector<8x128xf32>
    %231 = math.exp %230 : vector<8x128xf32>
    %cst_118 = arith.constant 1.000000e+00 : f32
    %232 = vector.broadcast %cst_118 : f32 to vector<8x128xf32>
    %233 = arith.addf %232, %231 : vector<8x128xf32>
    %234 = arith.divf %232, %233 : vector<8x128xf32>
    %235 = arith.mulf %19, %64 : vector<8x128xf32>
    %236 = arith.subf %234, %235 : vector<8x128xf32>
    %237 = arith.mulf %37, %73 : vector<8x128xf32>
    %238 = arith.subf %236, %237 : vector<8x128xf32>
    %239 = arith.mulf %55, %82 : vector<8x128xf32>
    %240 = arith.subf %238, %239 : vector<8x128xf32>
    %c2_119 = arith.constant 2 : index
    %c2_120 = arith.constant 2 : index
    %241 = arith.index_cast %1 : i32 to index
    %c0_121 = arith.constant 0 : index
    %242 = vector.load %arg5[%c2_119, %c2_120, %241, %c0_121] : memref<3x3x8x128xf32, #tpu.memory_space<vmem>>, vector<1x1x8x128xf32>
    %243 = vector.shape_cast %242 : vector<1x1x8x128xf32> to vector<8x128xf32>
    %244 = vector.shape_cast %240 : vector<8x128xf32> to vector<1x1x8x128xf32>
    tpu.vector_store %arg5[%c2_119, %c2_120, %241, %c0_121], %244 {strides = array<i32>} : memref<3x3x8x128xf32, #tpu.memory_space<vmem>>, vector<1x1x8x128xf32>,
    %c1_i32 = arith.constant 1 : i32
    return
  }
  func.func @transform_0(%arg0: i32) -> i32 {
    %c0_i32 = arith.constant 0 : i32
    %c0_i32_0 = arith.constant 0 : i32
    return %c0_i32 : i32
  }
  func.func @transform_1(%arg0: i32) -> (i32, i32, i32, i32) {
    %c0_i32 = arith.constant 0 : i32
    %c0_i32_0 = arith.constant 0 : i32
    %c0_i32_1 = arith.constant 0 : i32
    %c0_i32_2 = arith.constant 0 : i32
    return %c0_i32, %c0_i32_0, %arg0, %c0_i32_1 : i32, i32, i32, i32
  }
  func.func @transform_2(%arg0: i32) -> (i32, i32, i32, i32) {
    %c0_i32 = arith.constant 0 : i32
    %c0_i32_0 = arith.constant 0 : i32
    %c0_i32_1 = arith.constant 0 : i32
    %c0_i32_2 = arith.constant 0 : i32
    return %c0_i32, %c0_i32_0, %arg0, %c0_i32_1 : i32, i32, i32, i32
  }
  func.func @transform_3(%arg0: i32) -> (i32, i32, i32, i32) {
    %c0_i32 = arith.constant 0 : i32
    %c0_i32_0 = arith.constant 0 : i32
    %c0_i32_1 = arith.constant 0 : i32
    %c0_i32_2 = arith.constant 0 : i32
    return %c0_i32, %c0_i32_0, %arg0, %c0_i32_1 : i32, i32, i32, i32
  }
  func.func @transform_4(%arg0: i32) -> (i32, i32, i32, i32) {
    %c0_i32 = arith.constant 0 : i32
    %c0_i32_0 = arith.constant 0 : i32
    %c0_i32_1 = arith.constant 0 : i32
    %c0_i32_2 = arith.constant 0 : i32
    return %c0_i32, %c0_i32_0, %arg0, %c0_i32_1 : i32, i32, i32, i32
  }
}

</mosaic_0001>

<bundles_post_ra>
// kernel: tpu_custom_call.1
= control target key start
LH: loop header
LB: loop body
LE: loop exit
PB: predicated region body
PF: predicated region fallthrough
CT: control target
= control target key end

     0   :  { %s1446_s0 = inlined_call_operand.hbm [shape: f32[3], index: 0, kind: input, shape index: {}]   ;;  %s1447_s1 = inlined_call_operand.hbm [shape: f32[3,3,16,128], index: 1, kind: input, shape index: {}]   ;;  %s1448_s2 = inlined_call_operand.hbm [shape: f32[3,3,16,128], index: 2, kind: input, shape index: {}]   ;;  %s1449_s3 = inlined_call_operand.hbm [shape: f32[3,3,16,128], index: 3, kind: input, shape index: {}]   ;;  %s1450_s4 = inlined_call_operand.hbm [shape: f32[3,3,16,128], index: 4, kind: output, shape index: {}]  }
   0x1   :  { %1467 = sst [smem:[#allocation19_spill]] %s1447_s1 }
   0x2   :  { %1468 = sst [smem:[#allocation20_spill]] %s1448_s2 }
   0x3   :  { %9 = vsyncpa [#allocation5], 0 }
   0x4   :  { %10 = vsyncpa [#allocation3], 0 }
   0x5   :  { %12 = vsyncpa [#allocation3 + $0x1], 0 }
   0x6   :  { %13 = vsyncpa [#allocation8], 0 }
   0x7   :  { %15 = vsyncpa [#allocation8 + $0x1], 0 }
   0x8   :  { %16 = vsyncpa [#allocation4], 0 }
   0x9   :  { %18 = vsyncpa [#allocation4 + $0x1], 0  ;;  %s1057_s15 = smov 0   ;;  %s1059_s16 = smov 0  }
   0xa   :  { %s1061_s17 = smov 0   ;;  %s1063_s18 = smov 0  }
   0xb LB: > { %1469 = sst [smem:[#allocation15_spill]] %s1015_s17  ;;  %s1078_s19 = sadd.s32 1, %s1019_s18   ;;  %s1019_s18 = sphi %s1063_s18, %s1495_s18   ;;  %s1015_s17 = sphi %s1061_s17, %s1497_s17   ;;  %s1011_s16 = sphi %s1059_s16, %s1499_s16   ;;  %s1007_s15 = sphi %s1057_s15, %s1498_s15  }
   0xc   : > { %1470 = sst [smem:[#allocation16_spill]] %s1019_s18  ;;  %s52_s20 = sadd.s32 1, %s1015_s17 }
   0xd   : > { %1471 = sst [smem:[#allocation17_spill]] %s1078_s19  ;;  %s49_s21 = ssub.s32 %s1019_s18, %s1078_s19 }
   0xe   : > { %p1451_p0 = scmp.ne.s32.totalorder %s1015_s17, %s1011_s16  ;;  %p50_p1 = scmp.eq.s32.totalorder %s49_s21, 0 }
   0xf   : > { %p60_p2 = scmp.eq.s32.totalorder %s1019_s18, 0  ;;  %p764_p4 = scmp.lt.s32.totalorder %s1019_s18, 2 }
  0x10   : > { %s1089_s22 = scalar_select %p50_p1, %s1015_s17, %s52_s20  }
  0x11   : > { %p61_p5 = por %p60_p2, %p1451_p0  ;;  %s176_s23 = sand.u32 1, %s1015_s17  }
  0x12   : > { %1472 = sst [smem:[#allocation18_spill]] %s1089_s22  ;;  %s1097_s24 = smul.u32 72, %s176_s23 }
  0x13   : > { %s1100_s25 = sshll.u32 %s1019_s18, 7  ;;  %p1102_p6 = pnand %p764_p4, %p61_p5 }
  0x14   : > { %s196_s27 = sand.u32 1, %s1019_s18   ;;  %s1474_s2 = sld [smem:[#allocation20_spill]] }
  0x15   : > { %s200_s5 = scalar_lea.vmem [#allocation7], %s1097_s24  ;;  %s1116_s7 = scalar_lea.sflag [#allocation8], %s196_s27 }
  0x16   : > { %s206_s6 = sshll.u32 %s200_s5, 4  ;;  %p1122_p8 = pneg %p1102_p6  ;;  %s1114_s6 = int_to_ptr.vmem [resolvable:$true] %s206_s6 }
  0x1a   : > { %s1111_s30 = scalar_lea.hbm %s1474_s2, %s1100_s25  ;;  %s847_s12 = scalar_lea.hbm %s1474_s2, 2304 }
  0x1b   : > { %s842_s8 = scalar_lea.hbm %s1111_s30, 1152  ;;  %p848_p11 = scmp.lt.u32.totalorder %s1111_s30, %s1474_s2 }
  0x1c   : > { %p843_p7 = scmp.ne.s32.totalorder %s1111_s30, %s842_s8  ;;  %p849_p12 = scmp.lt.u32.totalorder %s847_s12, %s842_s8 }
  0x1d   : > { %p851_p1 = scmp.lt.u32.totalorder %s842_s8, %s1111_s30 }
  0x1e   : > { %p845_p9 = pnand %p1122_p8, %p843_p7  ;;  %p850_p13 = por %p849_p12, %p848_p11 }
  0x20   : > { %p846_p10 = pneg %p845_p9  ;;  %p852_p2 = por %p851_p1, %p850_p13 }
  0x22   : > { %p853_p4 = pnand %p852_p2, %p846_p10 }
  0x24   : > { %856 = shalt.err (!%p853_p4)
}
  0x25   : > { %s857_s20 = scalar_lea.vmem %s1114_s6, 1152  ;;  %s1021_s21 = smov [#allocation7]  }
  0x26   : > { %p858_p5 = scmp.ne.s32.totalorder %s1114_s6, %s857_s20  ;;  %s862_s27 = sshll.u32 %s1021_s21, 4  ;;  %s863_s27 = int_to_ptr.vmem [resolvable:$false] %s862_s27 }
  0x27   : > { %s864_s28 = scalar_lea.vmem %s863_s27, 2304  ;;  %p865_p3 = scmp.lt.s32.totalorder %s1114_s6, %s863_s27 }
  0x28   : > { %p860_p7 = pnand %p858_p5, %p1122_p8  ;;  %p866_p0 = scmp.lt.s32.totalorder %s864_s28, %s857_s20 }
  0x2a   : > { %p861_p9 = pneg %p860_p7  ;;  %p867_p11 = por %p866_p0, %p865_p3 }
  0x2c   : > { %p868_p12 = pnand %p867_p11, %p861_p9 }
  0x2e   : > { %871 = shalt.err (!%p868_p12)
}
  0x2f   : > { %s1452_s29 = smov 256   ;;  %s1454_s5 = smov 128  }
  0x30   : > { %s1456_s8 = smov 8   ;;  %s1150_s10 = sadd.s32 4294967295, %s1019_s18  }
  0x31   : > { %755 = dma.hbm_to_vmem [thread:$0]  (!%p1102_p6), %s1111_s30, 1152, %s1114_s6, %s1116_s7, %s1452_s29, %s1454_s5, %s1456_s8  }
  0x32   : > { %s674_s11 = sadd.s32 4294967294, %s1019_s18   ;;  %p65_p0 = scmp.ne.s32.totalorder %s1011_s16, %s1007_s15 }
  0x33   : > { %p1461_p3 = scmp.eq.s32.totalorder %s1150_s10, 0  ;;  %p141_p10 = scmp.eq.s32.totalorder %s1150_s10, 1 }
  0x34   : > { %p147_p13 = scmp.eq.s32.totalorder %s674_s11, 1  ;;  %p675_p1 = scmp.ge.s32.totalorder %s1019_s18, 1 }
  0x35   : > { %p1160_p2 = por %p1461_p3, %p65_p0  ;;  %p1477_p4 = scmp.ne.s32.totalorder %s1015_s17, %s1011_s16 }
  0x36   : > { %p1171_p7 = por %p147_p13, %p65_p0  ;;  %p154_p9 = scmp.lt.s32.totalorder %s1019_s18, 3 }
  0x37   : > { %s1476_s12 = scalar_select %p1160_p2, 1, 0 }
  0x38   : > { %p1167_p5 = por %p141_p10, %p1477_p4  ;;  %p1176_p11 = pnand %p675_p1, %p154_p9 }
  0x39   : > { %s1479_s6 = scalar_select %p1171_p7, 1, 0 }
  0x3a   : > { %s1478_s30 = scalar_select %p1167_p5, 1, 0 }
  0x3b   : > { %s1480_s13 = scalar_select %p1176_p11, 1, 0 }
  0x3c   : > { %s1481_s1 = sld [smem:[#allocation19_spill]]  ;;  %p745_p12 = pneg %p1176_p11 }
  0x3d   : > { %s180_s27 = scalar_lea.vmem [#allocation6], %s1097_s24  ;;  %s1201_s20 = scalar_lea.hbm %s1449_s3, %s1100_s25 }
  0x3e   : > { %s186_s28 = sshll.u32 %s180_s27, 4  ;;  %p1193_p0 = pnand %p745_p12, %p1461_p3  ;;  %s1189_s28 = int_to_ptr.vmem [resolvable:$true] %s186_s28 }
  0x3f   : > { %s1205_s5 = scalar_lea.sflag [#allocation3], %s176_s23 }
  0x40   : > { %s1482_s11 = scalar_select %p1193_p0, 1, 0 }
  0x42   : > { %s1184_s21 = scalar_lea.hbm %s1481_s1, %s1100_s25  ;;  %s877_s22 = scalar_lea.hbm %s1481_s1, 2304 }
  0x43   : > { %s872_s8 = scalar_lea.hbm %s1184_s21, 1152  ;;  %p878_p4 = scmp.lt.u32.totalorder %s1184_s21, %s1481_s1 }
  0x44   : > { %p873_p10 = scmp.ne.s32.totalorder %s1184_s21, %s872_s8  ;;  %p879_p9 = scmp.lt.u32.totalorder %s877_s22, %s872_s8 }
  0x45   : > { %p881_p3 = scmp.lt.u32.totalorder %s872_s8, %s1184_s21 }
  0x46   : > { %p875_p13 = pnand %p873_p10, %p1122_p8  ;;  %p880_p12 = por %p879_p9, %p878_p4 }
  0x48   : > { %p876_p1 = pneg %p875_p13  ;;  %p882_p7 = por %p881_p3, %p880_p12 }
  0x4a   : > { %p883_p5 = pnand %p882_p7, %p876_p1 }
  0x4c   : > { %886 = shalt.err (!%p883_p5)
}
  0x4d   : > { %s887_s23 = scalar_lea.vmem %s1189_s28, 1152  ;;  %s1025_s2 = smov [#allocation6]  }
  0x4e   : > { %p888_p10 = scmp.ne.s32.totalorder %s1189_s28, %s887_s23  ;;  %s892_s25 = sshll.u32 %s1025_s2, 4  ;;  %s893_s25 = int_to_ptr.vmem [resolvable:$false] %s892_s25 }
  0x4f   : > { %s894_s18 = scalar_lea.vmem %s893_s25, 2304  ;;  %p895_p11 = scmp.lt.s32.totalorder %s1189_s28, %s893_s25 }
  0x50   : > { %p890_p13 = pnand %p888_p10, %p1122_p8  ;;  %p896_p0 = scmp.lt.s32.totalorder %s894_s18, %s887_s23 }
  0x52   : > { %p891_p2 = pneg %p890_p13  ;;  %p897_p4 = por %p896_p0, %p895_p11 }
  0x54   : > { %p898_p9 = pnand %p897_p4, %p891_p2 }
  0x56   : > { %901 = shalt.err (!%p898_p9)
}
  0x57   : > { %s1483_s19 = smov 8   ;;  %s1484_s22 = smov 128  }
  0x58   : > { %s1485_s29 = smov 256   ;;  %s220_s8 = scalar_lea.vmem [#allocation9], %s1097_s24 }
  0x59   : > { %752 = dma.hbm_to_vmem [thread:$0]  (!%p1102_p6), %s1184_s21, 1152, %s1189_s28, %s1205_s5, %s1485_s29, %s1484_s22, %s1483_s19  }
  0x5a   : > { %s226_s14 = sshll.u32 %s220_s8, 4  ;;  %s902_s23 = scalar_lea.hbm %s1446_s0, 16  ;;  %s1249_s14 = int_to_ptr.vmem [resolvable:$true] %s226_s14 }
  0x5b   : > { %p903_p3 = scmp.ne.s32.totalorder %s1446_s0, %s902_s23  ;;  %p1486_p2 = scmp.ne.s32.totalorder %s1482_s11, 0 }
  0x5c   : > { %p909_p0 = scmp.lt.u32.totalorder %s902_s23, %s1446_s0 }
  0x5d   : > { %p904_p5 = pneg %p1486_p2 }
  0x5f   : > { %p905_p7 = pnand %p904_p5, %p903_p3 }
  0x61   : > { %p906_p11 = pneg %p905_p7 }
  0x63   : > { %p911_p1 = pnand %p909_p0, %p906_p11 }
  0x65   : > { %914 = shalt.err (!%p911_p1)
}
  0x66   : > { %s1026_s24 = smov [#allocation2]   ;;  %s915_s28 = scalar_lea.hbm %s1201_s20, 1152 }
  0x67   : > { %748 = dma.hbm_to_smem (!%p1486_p2), %s1446_s0, 16, %s1026_s24, [#allocation5]  }
  0x68   : > { %p916_p12 = scmp.ne.s32.totalorder %s1201_s20, %s915_s28  ;;  %s920_s11 = scalar_lea.hbm %s1449_s3, 2304 }
  0x69   : > { %p921_p4 = scmp.lt.u32.totalorder %s1201_s20, %s1449_s3  ;;  %p922_p9 = scmp.lt.u32.totalorder %s920_s11, %s915_s28 }
  0x6a   : > { %p918_p10 = pnand %p916_p12, %p1122_p8  ;;  %p924_p5 = scmp.lt.u32.totalorder %s915_s28, %s1201_s20 }
  0x6b   : > { %p923_p3 = por %p922_p9, %p921_p4 }
  0x6c   : > { %p919_p13 = pneg %p918_p10 }
  0x6d   : > { %p925_p7 = por %p924_p5, %p923_p3 }
  0x6f   : > { %p926_p2 = pnand %p925_p7, %p919_p13 }
  0x71   : > { %929 = shalt.err (!%p926_p2)
}
  0x72   : > { %s930_s2 = scalar_lea.vmem %s1249_s14, 1152  ;;  %s1027_s23 = smov [#allocation9]  }
  0x73   : > { %p931_p11 = scmp.ne.s32.totalorder %s1249_s14, %s930_s2  ;;  %s935_s25 = sshll.u32 %s1027_s23, 4  ;;  %s936_s25 = int_to_ptr.vmem [resolvable:$false] %s935_s25 }
  0x74   : > { %s937_s18 = scalar_lea.vmem %s936_s25, 2304  ;;  %p938_p12 = scmp.lt.s32.totalorder %s1249_s14, %s936_s25 }
  0x75   : > { %p933_p0 = pnand %p931_p11, %p1122_p8  ;;  %p939_p10 = scmp.lt.s32.totalorder %s937_s18, %s930_s2 }
  0x77   : > { %p934_p1 = pneg %p933_p0  ;;  %p940_p4 = por %p939_p10, %p938_p12 }
  0x79   : > { %p941_p9 = pnand %p940_p4, %p934_p1 }
  0x7b   : > { %944 = shalt.err (!%p941_p9)
}
  0x7c   : > { %758 = dma.hbm_to_vmem [thread:$0]  (!%p1102_p6), %s1201_s20, 1152, %s1249_s14, %s1116_s7, %s1485_s29, %s1484_s22, %s1483_s19  }
  0x7d   : > { %p1487_p8 = scmp.ne.s32.totalorder %s1480_s13, 0 }
  0x7e   : > { %p1488_p13 = scmp.eq.s32.totalorder (!%p1487_p8), %s1150_s10, 0 }
  0x7f   : > { %238 = sbr.rel (%p1487_p8) target bundleno = 212 (0xd4), region = 36 }
  0x86   : > { %990 = dma.done.wait (%p1488_p13), [#allocation5], 16   ;;  %p1489_p3 = pmov %p1488_p13 }
  0x87   : > { %s1283_s9 = sand.u32 1, %s1011_s16   ;;  %p1490_p6 = scmp.ne.s32.totalorder %s1476_s12, 0 }
  0x88   : > { %992 = vsyncadd (%p1489_p3), [#allocation5], 4294967280  ;;  %s1286_s26 = smul.u32 72, %s1283_s9  ;;  %s245_s24 = scalar_lea.sflag [#allocation3], %s1283_s9 }
  0x8a   : > { %s1290_s7 = scalar_lea.vmem [#allocation6], %s1286_s26 }
  0x8b   : > { %994 = dma.done.wait (%p1490_p6), %s245_s24, 1152  }
  0x8c   : > { %996 = vsyncadd (%p1490_p6), %s245_s24, 4294966144  ;;  %s253_s13 = sand.u32 1, %s1150_s10   ;;  %s1298_s19 = scalar_lea.vmem [#allocation7], %s1286_s26 }
  0x8d   : > { %s254_s20 = scalar_lea.sflag [#allocation8], %s253_s13 }
  0x8e   : > { %998 = dma.done.wait (%p1490_p6), %s254_s20, 2304  }
  0x8f   : > { %1000 = vsyncadd (%p1490_p6), %s254_s20, 4294964992  ;;  %s266_s22 = scalar_lea.vmem [#allocation9], %s1286_s26 }
  0x90   : > { %271 = sfence }
  0x91   : > { %v359_v0 = vld [vmem:[%s266_s22] sm:$0xff]  ;;  %v702_v2 = vld [vmem:[%s266_s22 + $0x8] sm:$0xff]  ;;  %v705_v4 = vld [vmem:[%s266_s22 + $0x10] sm:$0xff]  ;;  %s303_s29 = sld [smem:[#allocation2]]  ;;  %s686_s14 = sld [smem:[#allocation2 + $0x1]] }
  0x92   : > { %v701_v1 = vmul.f32 -1.442695, %v359_v0  ;;  %v703_v3 = vmul.f32 -1.442695, %v702_v2  ;;  %v706_v5 = vmul.f32 -1.442695, %v705_v4 }
  0x93   : > { %v708_v6 = vld [vmem:[%s266_s22 + $0x18] sm:$0xff]  ;;  %v711_v7 = vld [vmem:[%s266_s22 + $0x20] sm:$0xff]  ;;  %v714_v8 = vld [vmem:[%s266_s22 + $0x28] sm:$0xff]  ;;  %s690_s12 = sld [smem:[#allocation2 + $0x2]]  ;;  %s1363_s5 = scalar_lea.vmem [#allocation10], %s1286_s26 }
  0x94   : > { %806 = vpow2.f32 %v701_v1  ;;  %v709_v9 = vmul.f32 -1.442695, %v708_v6  ;;  %v712_v10 = vmul.f32 -1.442695, %v711_v7  ;;  %v715_v11 = vmul.f32 -1.442695, %v714_v8 }
  0x95   : > { %808 = vpow2.f32 %v703_v3  ;;  %v717_v12 = vld [vmem:[%s266_s22 + $0x30] sm:$0xff]  ;;  %v720_v14 = vld [vmem:[%s266_s22 + $0x38] sm:$0xff]  ;;  %v723_v18 = vld [vmem:[%s266_s22 + $0x40] sm:$0xff]  ;;  %s514_s21 = sshll.u32 %s1363_s5, 4  ;;  %s726_s28 = sshll.u32 %s1150_s10, 7  ;;  %s1394_s21 = int_to_ptr.vmem [resolvable:$true] %s514_s21 }
  0x96   : > { %810 = vpow2.f32 %v706_v5  ;;  %v718_v17 = vmul.f32 -1.442695, %v717_v12  ;;  %v302_v21 = vld [vmem:[%s1290_s7] sm:$0xff]  ;;  %v721_v23 = vmul.f32 -1.442695, %v720_v14  ;;  %v685_v26 = vld [vmem:[%s1290_s7 + $0x18] sm:$0xff]  ;;  %s1400_s11 = scalar_lea.hbm %s1450_s4, %s726_s28 }
  0x97   : > { %812 = vpow2.f32 %v709_v9  ;;  %v1306_v22 = vstv %s303_s29  ;;  %v724_v25 = vmul.f32 -1.442695, %v723_v18  ;;  %v1309_v27 = vstv %s686_s14  ;;  %v689_v29 = vld [vmem:[%s1290_s7 + $0x30] sm:$0xff]  ;;  %v1320_v34 = vld [vmem:[%s1298_s19 + $0x8] sm:$0xff]  ;;  %s502_s8 = scalar_lea.sflag [#allocation4], %s1283_s9  ;;  %s945_s10 = scalar_lea.vmem %s1394_s21, 1152 }
  0x98   : > { %814 = vpow2.f32 %v712_v10  ;;  %v305_v28 = vadd.f32 %v1306_v22, %v302_v21  ;;  %v1316_v31 = vld [vmem:[%s1298_s19] sm:$0xff]  ;;  %v319_v33 = vadd.f32 %v685_v26, %v1309_v27  ;;  %v1323_v36 = vld [vmem:[%s1298_s19 + $0x18] sm:$0xff]  ;;  %v1331_v42 = vld [vmem:[%s1298_s19 + $0x10] sm:$0xff]  ;;  %p946_p5 = scmp.ne.s32.totalorder %s1394_s21, %s945_s10  ;;  %p1491_p7 = scmp.ne.s32.totalorder %s1478_s30, 0 }
  0x99   : > { %816 = vpow2.f32 %v715_v11  ;;  %v1313_v30 = vstv %s690_s12  ;;  %v1328_v41 = vld [vmem:[%s1298_s19 + $0x20] sm:$0xff]  ;;  %v1334_v44 = vld [vmem:[%s1298_s19 + $0x30] sm:$0xff]  ;;  %v683_v46 = vld [vmem:[%s1290_s7 + $0x8] sm:$0xff]  ;;  %s1028_s27 = smov [#allocation10]  }
  0x9a   : > { %v333_v39 = vadd.f32 %v689_v29, %v1313_v30  ;;  %v366_v40 = vmul.f32 %v1316_v31, %v305_v28  ;;  %v381_v45 = vmul.f32 %v1320_v34, %v305_v28  ;;  %v368_v48 = vmul.f32 %v1323_v36, %v319_v33  ;;  %v1340_v49 = vld [vmem:[%s1298_s19 + $0x38] sm:$0xff]  ;;  %v1343_v50 = vld [vmem:[%s1298_s19 + $0x28] sm:$0xff]  ;;  %v687_v54 = vld [vmem:[%s1290_s7 + $0x20] sm:$0xff]  ;;  %p947_p2 = pnand %p946_p5, %p1491_p7  ;;  %s949_s2 = sshll.u32 %s1028_s27, 4  ;;  %s950_s2 = int_to_ptr.vmem [resolvable:$false] %s949_s2 }
  0x9b   : > { %v383_v52 = vmul.f32 %v1328_v41, %v319_v33  ;;  %v397_v53 = vmul.f32 %v1331_v42, %v305_v28  ;;  %v1350_v58 = vld [vmem:[%s1298_s19 + $0x40] sm:$0xff]  ;;  %v309_v59 = vadd.f32 %v683_v46, %v1306_v22  ;;  %v691_v60 = vld [vmem:[%s1290_s7 + $0x38] sm:$0xff]  ;;  %v399_v0 = vmul.f32 %v1343_v50, %v319_v33  ;;  %v688_v21 = vld [vmem:[%s1290_s7 + $0x28] sm:$0xff]  ;;  %s951_s23 = scalar_lea.vmem %s950_s2, 2304  ;;  %p952_p0 = scmp.lt.s32.totalorder %s1394_s21, %s950_s2 }
  0x9c   : > { %v370_v57 = vmul.f32 %v1334_v44, %v333_v39  ;;  %v385_v63 = vmul.f32 %v1340_v49, %v333_v39  ;;  %v323_v3 = vadd.f32 %v687_v54, %v1309_v27  ;;  %v401_v8 = vmul.f32 %v1350_v58, %v333_v39  ;;  %p948_p11 = pneg %p947_p2  ;;  %p953_p1 = scmp.lt.s32.totalorder %s951_s23, %s945_s10 }
  0x9d   : > { %v337_v9 = vadd.f32 %v691_v60, %v1313_v30  ;;  %v413_v12 = vmul.f32 %v1316_v31, %v309_v59 }
  0x9e   : > { %v807_v13 = vpop.eup %806  ;;  %v447_v33 = vmul.f32 %v1343_v50, %v323_v3  ;;  %p954_p12 = por %p953_p1, %p952_p0 }
  0x9f   : > { %v809_v15 = vpop.eup %808  ;;  %v363_v16 = vadd.f32 1.0, %v807_v13  ;;  %v684_v13 = vld [vmem:[%s1290_s7 + $0x10] sm:$0xff]  ;;  %v433_v39 = vmul.f32 %v1340_v49, %v337_v9 }
  0xa0   : > { %v378_v19 = vadd.f32 1.0, %v809_v15  ;;  %v811_v20 = vpop.eup %810  ;;  %v313_v26 = vadd.f32 %v684_v13, %v1306_v22  ;;  %v449_v22 = vmul.f32 %v1350_v58, %v337_v9  ;;  %p955_p10 = pnand %p954_p12, %p948_p11 }
  0xa1   : > { %818 = vrcp.f32 %v363_v16  ;;  %v394_v24 = vadd.f32 1.0, %v811_v20  ;;  %v813_v32 = vpop.eup %812  ;;  %v445_v20 = vmul.f32 %v1331_v42, %v309_v59 }
  0xa2   : > { %820 = vrcp.f32 %v378_v19  ;;  %v815_v35 = vpop.eup %814  ;;  %v410_v37 = vadd.f32 1.0, %v813_v32  ;;  %v415_v19 = vmul.f32 %v1323_v36, %v323_v3  ;;  %v417_v32 = vmul.f32 %v1334_v44, %v337_v9 }
  0xa3   : > { %822 = vpow2.f32 %v718_v17  ;;  %v817_v38 = vpop.eup %816  ;;  %v426_v43 = vadd.f32 1.0, %v815_v35  ;;  %v429_v17 = vmul.f32 %v1320_v34, %v309_v59  ;;  %v692_v35 = vld [vmem:[%s1290_s7 + $0x40] sm:$0xff] }
  0xa4   : > { %824 = vrcp.f32 %v394_v24  ;;  %v442_v47 = vadd.f32 1.0, %v817_v38 }
  0xa5   : > { %826 = vpow2.f32 %v721_v23 }
  0xa6   : > { %828 = vpow2.f32 %v724_v25  ;;  %v431_v25 = vmul.f32 %v1328_v41, %v323_v3 }
  0xa7   : > { %830 = vrcp.f32 %v410_v37 }
  0xa8   : > { %832 = vrcp.f32 %v426_v43 }
  0xa9   : > { %834 = vrcp.f32 %v442_v47  ;;  %v341_v47 = vadd.f32 %v692_v35, %v1313_v30 }
  0xab   : > { %v819_v51 = vpop.eup %818  ;;  %v465_v30 = vmul.f32 %v1334_v44, %v341_v47  ;;  %v497_v44 = vmul.f32 %v1350_v58, %v341_v47 }
  0xac   : > { %v821_v55 = vpop.eup %820  ;;  %v367_v56 = vsub.f32 %v819_v51, %v366_v40  ;;  %v327_v40 = vadd.f32 %v688_v21, %v1309_v27 }
  0xad   : > { %v823_v61 = vpop.eup %822  ;;  %v382_v62 = vsub.f32 %v821_v55, %v381_v45  ;;  %v477_v55 = vmul.f32 %v1320_v34, %v313_v26 }
  0xae   : > { %v825_v1 = vpop.eup %824  ;;  %v369_v2 = vsub.f32 %v367_v56, %v368_v48  ;;  %v458_v4 = vadd.f32 1.0, %v823_v61  ;;  %v461_v48 = vmul.f32 %v1316_v31, %v313_v26  ;;  %v463_v54 = vmul.f32 %v1323_v36, %v327_v40 }
  0xaf   : > { %v827_v5 = vpop.eup %826  ;;  %v384_v6 = vsub.f32 %v382_v62, %v383_v52  ;;  %v398_v7 = vsub.f32 %v825_v1, %v397_v53  ;;  %v479_v31 = vmul.f32 %v1328_v41, %v327_v40  ;;  %v495_v61 = vmul.f32 %v1343_v50, %v327_v40 }
  0xb0   : > { %v829_v10 = vpop.eup %828  ;;  %v371_v11 = vsub.f32 %v369_v2, %v370_v57  ;;  %836 = vrcp.f32 %v458_v4  ;;  %v474_v14 = vadd.f32 1.0, %v827_v5  ;;  %v493_v57 = vmul.f32 %v1331_v42, %v313_v26 }
  0xb1   : > { %v386_v15 = vsub.f32 %v384_v6, %v385_v63  ;;  %v400_v16 = vsub.f32 %v398_v7, %v399_v0  ;;  %v490_v18 = vadd.f32 1.0, %v829_v10  ;;  %v831_v23 = vpop.eup %830  ;;  %v481_v42 = vmul.f32 %v1340_v49, %v341_v47 }
  0xb2   : > { %372 = vst [vmem:[%s1363_s5] sm:$0xff] %v371_v11  ;;  %838 = vrcp.f32 %v474_v14  ;;  %v833_v28 = vpop.eup %832  ;;  %v414_v29 = vsub.f32 %v831_v23, %v413_v12 }
  0xb3   : > { %704 = vst [vmem:[%s1363_s5 + $0x8] sm:$0xff] %v386_v15  ;;  %v402_v24 = vsub.f32 %v400_v16, %v401_v8  ;;  %840 = vrcp.f32 %v490_v18  ;;  %v835_v37 = vpop.eup %834  ;;  %v430_v38 = vsub.f32 %v833_v28, %v429_v17 }
  0xb4   : > { %v416_v43 = vsub.f32 %v414_v29, %v415_v19  ;;  %v446_v45 = vsub.f32 %v835_v37, %v445_v20 }
  0xb5   : > { %707 = vst [vmem:[%s1363_s5 + $0x10] sm:$0xff] %v402_v24  ;;  %v432_v46 = vsub.f32 %v430_v38, %v431_v25 }
  0xb6   : > { %v418_v51 = vsub.f32 %v416_v43, %v417_v32  ;;  %v448_v52 = vsub.f32 %v446_v45, %v447_v33 }
  0xb7   : > { %v434_v53 = vsub.f32 %v432_v46, %v433_v39 }
  0xb8   : > { %710 = vst [vmem:[%s1363_s5 + $0x18] sm:$0xff] %v418_v51  ;;  %v450_v56 = vsub.f32 %v448_v52, %v449_v22 }
  0xb9   : > { %713 = vst [vmem:[%s1363_s5 + $0x20] sm:$0xff] %v434_v53 }
  0xba   : > { %v837_v27 = vpop.eup %836  ;;  %716 = vst [vmem:[%s1363_s5 + $0x28] sm:$0xff] %v450_v56 }
  0xbb   : > { %v462_v59 = vsub.f32 %v837_v27, %v461_v48 }
  0xbc   : > { %v839_v60 = vpop.eup %838 }
  0xbd   : > { %v841_v36 = vpop.eup %840  ;;  %v464_v34 = vsub.f32 %v462_v59, %v463_v54  ;;  %v478_v62 = vsub.f32 %v839_v60, %v477_v55 }
  0xbe   : > { %v494_v63 = vsub.f32 %v841_v36, %v493_v57 }
  0xbf   : > { %v466_v41 = vsub.f32 %v464_v34, %v465_v30  ;;  %v480_v0 = vsub.f32 %v478_v62, %v479_v31 }
  0xc0   : > { %v496_v50 = vsub.f32 %v494_v63, %v495_v61 }
  0xc1   : > { %719 = vst [vmem:[%s1363_s5 + $0x30] sm:$0xff] %v466_v41  ;;  %v482_v1 = vsub.f32 %v480_v0, %v481_v42 }
  0xc2   : > { %v498_v49 = vsub.f32 %v496_v50, %v497_v44 }
  0xc3   : > { %722 = vst [vmem:[%s1363_s5 + $0x38] sm:$0xff] %v482_v1 }
  0xc4   : > { %725 = vst [vmem:[%s1363_s5 + $0x40] sm:$0xff] %v498_v49 }
  0xc5   : > { %958 = shalt.err (!%p955_p10)
}
  0xc6   : > { %s959_s25 = scalar_lea.hbm %s1400_s11, 1152  ;;  %s963_s24 = scalar_lea.hbm %s1450_s4, 2304 }
  0xc7   : > { %p960_p4 = scmp.ne.s32.totalorder %s1400_s11, %s959_s25  ;;  %p964_p13 = scmp.lt.u32.totalorder %s1400_s11, %s1450_s4 }
  0xc8   : > { %p965_p3 = scmp.lt.u32.totalorder %s963_s24, %s959_s25  ;;  %p967_p5 = scmp.lt.u32.totalorder %s959_s25, %s1400_s11 }
  0xc9   : > { %p961_p9 = pnand %p960_p4, %p1491_p7 }
  0xca   : > { %p966_p6 = por %p965_p3, %p964_p13 }
  0xcb   : > { %p962_p8 = pneg %p961_p9 }
  0xcc   : > { %p968_p2 = por %p967_p5, %p966_p6 }
  0xce   : > { %p969_p11 = pnand %p968_p2, %p962_p8 }
  0xd0   : > { %972 = shalt.err (!%p969_p11)
}
  0xd1   : > { %s1029_s20 = smov 128   ;;  %s1030_s19 = smov 256  }
  0xd2   : > { %s1031_s22 = smov 8  }
  0xd3   : > { %743 = dma.vmem_to_hbm [thread:$0]  (%p1491_p7), %s1394_s21, 1152, %s1400_s11, %s502_s8, %s1029_s20, %s1030_s19, %s1031_s22  }
  0xd4 PF: > { %s1492_s29 = sld [smem:[#allocation16_spill]]  ;;  %s529_s14 = sand.u32 1, %s1007_s15  }
  0xd5   : > { %p1493_p0 = scmp.ne.s32.totalorder %s1479_s6, 0  ;;  %s530_s12 = scalar_lea.sflag [#allocation4], %s529_s14 }
  0xda   : > { %p1494_p1 = scmp.ge.s32.totalorder %s1492_s29, 2 }
  0xdc   : > { %p760_p12 = pnand %p1494_p1, %p1493_p0 }
  0xde   : > { %1002 = dma.done.wait (!%p760_p12), %s530_s12, 1152  }
  0xdf   : > { %1004 = vsyncadd (!%p760_p12), %s530_s12, 4294966144  ;;  %s1495_s18 = sld [smem:[#allocation17_spill]]  ;;  %s1496_s5 = sld [smem:[#allocation15_spill]] }
  0xe0   : > { %s1497_s17 = sld [smem:[#allocation18_spill]]  ;;  %s1498_s15 = smov %s1011_s16 }
  0xe5   : > { %p21_p10 = scmp.ge.s32.totalorder %s1495_s18, 4   ;;  %s1499_s16 = smov %s1496_s5 }
  0xe7   :  { %23 = sbr.rel (!%p21_p10) target bundleno = 11 (0xb), region = 142 }
  0xee   :  { %535 = vsyncpa [#allocation3], 1 }
  0xef   :  { %537 = vsyncpa [#allocation3 + $0x1], 1 }
  0xf0   :  { %538 = vsyncpa [#allocation8], 1 }
  0xf1   :  { %540 = vsyncpa [#allocation8 + $0x1], 1 }
  0xf2   :  { %541 = vsyncpa [#allocation4], 1 }
  0xf3   :  { %543 = vsyncpa [#allocation4 + $0x1], 1 }
  0xf4   :  { %544 = vsyncpa [#allocation5], 1 }
  0xf5   :  { %546 = vsyncpa [#allocation5 + $0x1], 1 }

</bundles_post_ra>
